<compile_context>
chip_gen: v7x
topology: tpu7x:2x2x1
jax: 0.10.0
libtpu: 0.0.40
codegen_flags: <defaults>
</compile_context>

<pallas_src>
import functools
import math

import numpy as np
import jax
import jax.numpy as jnp
from jax.experimental import pallas as pl
from jax.experimental.pallas import tpu as pltpu

INV_LN2 = 1.0 / math.log(2.0)


# ---------------------------------------------------------------------------
# Pallas kernels
# ---------------------------------------------------------------------------
def _layernorm_kernel(x_ref, g_ref, b_ref, o_ref):
    x = x_ref[...]                                            # (B*N, D)
    mu = jnp.mean(x, axis=-1, keepdims=True)
    var = jnp.mean((x - mu) ** 2, axis=-1, keepdims=True)     # biased, like torch
    o_ref[...] = (x - mu) * jax.lax.rsqrt(var + 1e-5) * g_ref[...] + b_ref[...]


def layer_norm(x, gamma, beta):
    """PreNorm2pm LayerNorm: one whole-slab Pallas call (no per-batch grid)."""
    b, n, d = x.shape
    out = pl.pallas_call(
        _layernorm_kernel,
        out_shape=jax.ShapeDtypeStruct((b * n, d), jnp.float32),
    )(x.reshape(b * n, d), gamma, beta)
    return out.reshape(b, n, d)


def _score_kernel(prob_ref, rowsum_ref, colsum_ref, score_ref):
    # entropy = -sum_c p*log2(p+1e-10); FixCNN (all-ones kxk conv, stride s)
    # expressed as rowsum @ entropy @ colsum.  Runs ONCE per forward (hoisted).
    rows = rowsum_ref[...]
    cols = colsum_ref[...]
    for bi in range(prob_ref.shape[0]):                       # tiny static unroll
        p = prob_ref[bi]                                      # (C, H, W)
        ent = -jnp.sum(p * (jnp.log(p + 1e-10) * INV_LN2), axis=0)
        tmp = jnp.dot(rows, ent, preferred_element_type=jnp.float32)
        score_ref[bi] = jnp.dot(tmp, cols, preferred_element_type=jnp.float32)


def window_scores(prob, rowsum, colsum):
    b = prob.shape[0]
    oh, ow = rowsum.shape[0], colsum.shape[1]
    return pl.pallas_call(
        _score_kernel,
        out_shape=jax.ShapeDtypeStruct((b, oh, ow), jnp.float32),
    )(prob, rowsum, colsum)


def _window_attn_kernel(xw_ref, ab_ref, bout_ref, o_ref):
    """Multi-head window attention for one block of windows.

    xw_ref  : (w_blk, n, d)    bf16 window tokens
    ab_ref  : (2*heads, d, d)  bf16 = [A_0..A_{H-1}, B_0..B_{H-1}]
                               A_h = scale * Wq_h Wk_h^T  (softmax scale folded)
                               B_h = Wv_h  Wout_h^T       (output proj folded)
    bout_ref: (1, d)           f32 output bias
    o_ref   : (w_blk, n, d)    f32
    """
    wb, n, d = xw_ref.shape
    heads = ab_ref.shape[0] // 2
    x3 = xw_ref[...]                                          # (wb, n, d) bf16
    x2 = x3.reshape(wb * n, d)

    out = None
    for h in range(heads):                                    # static, small (heads=4)
        # scores: (X Wq_h)(X Wk_h)^T * scale == (X A_h) X^T  -> contraction K=d
        xa = jnp.dot(x2, ab_ref[h], preferred_element_type=jnp.float32)
        xa3 = xa.astype(jnp.bfloat16).reshape(wb, n, d)
        s = jnp.einsum('wqd,wkd->wqk', xa3, x3,
                       preferred_element_type=jnp.float32)    # (wb, n, n) f32
        # softmax statistics stay in f32 (no bf16 VPU/EUP path on v5e)
        s = s - jnp.max(s, axis=-1, keepdims=True)
        e = jnp.exp(s)
        attn = e * pl.reciprocal(jnp.sum(e, axis=-1, keepdims=True), approx=True)
        # values with the output projection already folded in:  attn @ (X B_h)
        xb = jnp.dot(x2, ab_ref[heads + h], preferred_element_type=jnp.float32)
        xb3 = xb.astype(jnp.bfloat16).reshape(wb, n, d)
        o_h = jnp.einsum('wqk,wkd->wqd', attn.astype(jnp.bfloat16), xb3,
                         preferred_element_type=jnp.float32)  # (wb, n, d)
        out = o_h if out is None else out + o_h

    o_ref[...] = out + bout_ref[...]                          # bias broadcast once


def window_attention(xw, ab, bout, *, w_blk):
    m_pad, n, d = xw.shape
    assert m_pad % w_blk == 0
    return pl.pallas_call(
        _window_attn_kernel,
        out_shape=jax.ShapeDtypeStruct((m_pad, n, d), jnp.float32),
        grid=(m_pad // w_blk,),
        in_specs=[pl.BlockSpec((w_blk, n, d), lambda g: (g, 0, 0)),
                  pl.BlockSpec(ab.shape, lambda g: (0, 0, 0)),
                  pl.BlockSpec(bout.shape, lambda g: (0, 0))],
        out_specs=pl.BlockSpec((w_blk, n, d), lambda g: (g, 0, 0)),
        compiler_params=pltpu.CompilerParams(
            dimension_semantics=("parallel",),
            vmem_limit_bytes=32 * 1024 * 1024),
    )(xw, ab, bout)


# ---------------------------------------------------------------------------
# Host glue (runs ONCE per forward)
# ---------------------------------------------------------------------------
def shifted_windows(height, width, win_size):
    shift_y = np.arange(0, height - win_size + 1, win_size // 2)
    shift_x = np.arange(0, width - win_size + 1, win_size // 2)
    sx, sy = np.meshgrid(shift_x, shift_y)
    win = np.stack((sx.ravel(), sy.ravel(), sx.ravel(), sy.ravel()), axis=1)
    win = win.reshape(-1, 4).astype(np.int64)
    win[:, 2] = win[:, 0] + win_size - 1
    win[:, 3] = win[:, 1] + win_size - 1
    return win


def nms_numpy(boxes, scores, iou_threshold):
    # TODO(synk): torchvision.ops.nms has no Pallas equivalent (sequential,
    # data-dependent greedy selection); reproduced on host in NumPy (runs once).
    x1, y1, x2, y2 = boxes[:, 0], boxes[:, 1], boxes[:, 2], boxes[:, 3]
    areas = (x2 - x1) * (y2 - y1)
    order = np.argsort(-scores, kind="stable")
    suppressed = np.zeros(boxes.shape[0], dtype=bool)
    keep = []
    for idx in order:
        if suppressed[idx]:
            continue
        keep.append(int(idx))
        xx1 = np.maximum(x1[idx], x1); yy1 = np.maximum(y1[idx], y1)
        xx2 = np.minimum(x2[idx], x2); yy2 = np.minimum(y2[idx], y2)
        inter = np.clip(xx2 - xx1, 0, None) * np.clip(yy2 - yy1, 0, None)
        iou = inter / (areas[idx] + areas - inter)
        newly = iou > iou_threshold
        newly[idx] = False
        suppressed |= newly
    return np.asarray(keep, dtype=np.int64)


def box_filter_matrices(h, w, ksize, stride):
    oh = (h - ksize) // stride + 1
    ow = (w - ksize) // stride + 1
    rows = np.zeros((oh, h), np.float32)
    cols = np.zeros((w, ow), np.float32)
    for o in range(oh):
        rows[o, o * stride:o * stride + ksize] = 1.0
    for o in range(ow):
        cols[o * stride:o * stride + ksize, o] = 1.0
    return jnp.asarray(rows), jnp.asarray(cols)


def _roi_interp_matrices(start, length, size, out_size):
    """Separable bilinear interpolation matrix for torchvision roi_align
    (spatial_scale=1, sampling_ratio=-1 -> one sample per bin, aligned=False).
    start/length: (...,);  returns (..., out_size, size)."""
    bin_sz = length / out_size
    idx = jnp.arange(out_size, dtype=jnp.float32) + 0.5
    c = start[..., None] + idx * bin_sz[..., None]            # (..., out)
    valid = (c >= -1.0) & (c <= float(size))
    c = jnp.maximum(c, 0.0)
    lo = jnp.floor(c)
    at_edge = lo >= size - 1
    lo = jnp.where(at_edge, float(size - 1), lo)
    hi = jnp.where(at_edge, float(size - 1), lo + 1.0)
    frac = jnp.where(at_edge, 0.0, c - lo)
    grid = jnp.arange(size, dtype=jnp.float32)
    m = ((grid == lo[..., None]).astype(jnp.float32) * (1.0 - frac)[..., None]
         + (grid == hi[..., None]).astype(jnp.float32) * frac[..., None])
    return m * valid[..., None].astype(jnp.float32)


def _choose_blocks(m_tot, target):
    """Largest window-block size that gives an EVEN grid of >= 2 steps
    (v7x has 2 TensorCores; on v5e/v6e the even-count constraint is a no-op)."""
    cdiv = lambda a, b: -(-a // b)
    n_blk = max(2, cdiv(m_tot, target))
    n_blk += n_blk % 2
    w_blk = cdiv(m_tot, n_blk)
    return w_blk, n_blk * w_blk


def prepare_attention_params(p, *, heads, dim_head):
    """Host-side weight folding: softmax scale into A_h, output proj into B_h."""
    wqkv = p["wqkv"]                                          # (d, 3*inner) = to_qkv.weight^T
    wout = p["wout"]                                          # (d, inner)   = to_out[0].weight
    d = wqkv.shape[0]
    inner = heads * dim_head
    scale = float(dim_head) ** -0.5
    wq, wk, wv = wqkv[:, :inner], wqkv[:, inner:2 * inner], wqkv[:, 2 * inner:]
    mats = []
    for h in range(heads):
        sl = slice(h * dim_head, (h + 1) * dim_head)
        mats.append(scale * (wq[:, sl] @ wk[:, sl].T))        # A_h  (d, d)
    for h in range(heads):
        sl = slice(h * dim_head, (h + 1) * dim_head)
        mats.append(wv[:, sl] @ wout[:, sl].T)                # B_h  (d, d)
    ab = jnp.stack(mats, axis=0).astype(jnp.bfloat16)         # (2*heads, d, d)
    bout = p["bout"].reshape(1, d).astype(jnp.float32)        # to_out[0].bias
    return {"ab": ab, "bout": bout}


# ---------------------------------------------------------------------------
# One layer (LayerNorm -> roi_align -> window attention -> scatter) fully on
# device with fixed shapes: compiled once, reused for every layer.
# ---------------------------------------------------------------------------
@functools.partial(jax.jit,
                   static_argnames=("win_size", "h2", "w2", "w_blk", "m_pad"))
def _layer_device(x, boxes, valid, ln_gamma, ln_beta, ab, bout, *,
                  win_size, h2, w2, w_blk, m_pad):
    b, keep_num, _ = boxes.shape
    _, N, d = x.shape
    ws = win_size
    n_tok = ws * ws
    m_tot = b * keep_num

    # PreNorm2pm
    xn = layer_norm(x, ln_gamma, ln_beta)

    # roi_align via separable bilinear interpolation matrices (MXU, no gathers)
    bx1, by1, bx2, by2 = boxes[..., 0], boxes[..., 1], boxes[..., 2], boxes[..., 3]
    roi_w = jnp.maximum(bx2 - bx1, 1.0)
    roi_h = jnp.maximum(by2 - by1, 1.0)
    ry = _roi_interp_matrices(by1, roi_h, h2, ws)             # (b, K, ws, h2)
    cx = _roi_interp_matrices(bx1, roi_w, w2, ws)             # (b, K, ws, w2)
    x4 = xn.reshape(b, h2, w2, d)
    feats = jnp.einsum('bkiy,byxd,bkjx->bkijd', ry, x4, cx)   # (b, K, ws, ws, d)
    xw = feats.reshape(m_tot, n_tok, d)

    # pad window count to the (static) block multiple; cast once to bf16
    if m_pad > m_tot:
        xw = jnp.pad(xw, ((0, m_pad - m_tot), (0, 0), (0, 0)))
    xw = xw.astype(jnp.bfloat16)

    out = window_attention(xw, ab, bout, w_blk=w_blk)         # (m_pad, n_tok, d) f32

    out_win = out[:m_tot].reshape(b, keep_num, ws, ws, d)
    out_win = out_win * valid[:, :, None, None, None]         # mask padded/invalid windows

    # scatter-add back onto the (h2, w2) grid via one-hot placement matrices
    r_idx = jnp.arange(h2, dtype=jnp.float32)
    c_idx = jnp.arange(w2, dtype=jnp.float32)
    k_idx = jnp.arange(ws, dtype=jnp.float32)
    R = (r_idx[None, None, :, None] ==
         by1[:, :, None, None] + k_idx[None, None, None, :]).astype(jnp.float32)
    R = R * valid[:, :, None, None]                           # (b, K, h2, ws)
    C = (c_idx[None, None, None, :] ==
         bx1[:, :, None, None] + k_idx[None, None, :, None]).astype(jnp.float32)  # (b, K, ws, w2)

    outx_2d = jnp.einsum('bkri,bkijd,bkjc->bdrc', R, out_win, C)       # (b, d, h2, w2)
    win_cnt = jnp.einsum('bkr,bkc->brc', R.sum(axis=3), C.sum(axis=2))  # (b, h2, w2)

    outx = outx_2d / (win_cnt[:, None, :, :] + 1e-10)         # uncovered pixels -> ~0
    outx = jnp.transpose(outx, (0, 2, 3, 1)).reshape(b, N, d)

    # Reference: PreNorm2pm feeds norm(x) into Attention_local, which returns
    # norm(x) + attention output (no extra outer residual).
    return xn + outx


def attention_local_layer(x, boxes, valid, layer_params, prepared, *,
                          win_size, h2, w2, w_blk, m_pad):
    return _layer_device(x, boxes, valid,
                         layer_params["ln_gamma"], layer_params["ln_beta"],
                         prepared["ab"], prepared["bout"],
                         win_size=win_size, h2=h2, w2=w2,
                         w_blk=w_blk, m_pad=m_pad)


def transformer_local(x, fore_score, layers, *, heads, dim_head, win_size,
                      img_height, img_width, w_blk_target=48):
    b, c, h, w = fore_score.shape
    ws = win_size

    # ---- window scoring + NMS: depends only on fore_score, so it is computed
    # ONCE per forward (hoisted out of the layer loop; one host sync total) ----
    ksize = ws // 2
    stride = max(ksize // 2, 1)
    rows, cols = box_filter_matrices(h, w, ksize, stride)
    denom = float((ws // 2) * (ws // 2))
    score2d = window_scores(fore_score, rows, cols)           # Pallas, one call
    win_score = np.asarray(jax.device_get(score2d)).reshape(b, -1) / denom

    window = shifted_windows(img_height, img_width, ws)
    keep_num = max(min(int(0.7 * (2 * h // ws) ** 2), 96), 1)
    boxes_np = np.zeros((b, keep_num, 4), np.float32)
    boxes_np[:, :, 2] = ws - 1.0
    boxes_np[:, :, 3] = ws - 1.0
    valid_np = np.zeros((b, keep_num), np.float32)
    for i in range(b):
        keep = nms_numpy(window.astype(np.float32), win_score[i], 0.2)[:keep_num]
        m = keep.shape[0]
        if m:
            boxes_np[i, :m] = window[keep].astype(np.float32)
            valid_np[i, :m] = 1.0
    boxes = jnp.asarray(boxes_np)
    valid = jnp.asarray(valid_np)

    w_blk, m_pad = _choose_blocks(b * keep_num, w_blk_target)

    # host-side weight folding, once per layer
    prepared = [prepare_attention_params(p, heads=heads, dim_head=dim_head)
                for p in layers]

    for p, ap in zip(layers, prepared):
        x = attention_local_layer(x, boxes, valid, p, ap,
                                  win_size=ws, h2=2 * h, w2=2 * w,
                                  w_blk=w_blk, m_pad=m_pad)
    return x


# ---------------------------------------------------------------------------
if __name__ == "__main__":
    # Small configuration consistent with the module's shape relations:
    #   x is (B, (2h)*(2w), dim),  fore_score is (B, C, h, w),  img = (2h, 2w)
    dim, depth, heads, dim_head = 32, 2, 4, 8
    win_size, img_height, img_width = 8, 16, 16
    B, C = 2, 4
    H, W = img_height // 2, img_width // 2
    N = img_height * img_width

    key = jax.random.PRNGKey(0)
    key, kx, kp = jax.random.split(key, 3)
    x = jax.random.normal(kx, (B, N, dim), dtype=jnp.float32)
    fore_score = jax.nn.softmax(
        jax.random.normal(kp, (B, C, H, W)), axis=1).astype(jnp.float32)

    inner = heads * dim_head
    layers = []
    for _ in range(depth):
        key, k1, k2, k3 = jax.random.split(key, 4)
        layers.append(dict(
            ln_gamma=jnp.ones((1, dim), jnp.float32),          # nn.LayerNorm init
            ln_beta=jnp.zeros((1, dim), jnp.float32),
            # to_qkv.weight^T  (dim, 3*inner), bias-free like the reference
            wqkv=(0.05 * jax.random.normal(k1, (dim, 3 * inner))).astype(jnp.float32),
            # to_out[0].weight (dim, inner)
            wout=(0.05 * jax.random.normal(k2, (dim, inner))).astype(jnp.float32),
            # to_out[0].bias (dim,)
            bout=(0.05 * jax.random.normal(k3, (dim,))).astype(jnp.float32),
        ))
        # TODO(synk): FeedForward / PreNorm(ff) params exist in __init__ but the
        # reference Transformer_local.forward never calls `ff`, so they are omitted.

    out = transformer_local(x, fore_score, layers,
                            heads=heads, dim_head=dim_head, win_size=win_size,
                            img_height=img_height, img_width=img_width)
    jax.block_until_ready(out)
    assert out.shape == (B, N, dim)
    print("KERNEL_OK")
</pallas_src>

<mosaic_0001>
module attributes {stable_mosaic.version = 11 : i64} {
  func.func @_score_kernel(%arg0: memref<2x4x8x8xf32, #tpu.memory_space<vmem>>, %arg1: memref<3x8xf32, #tpu.memory_space<vmem>>, %arg2: memref<8x3xf32, #tpu.memory_space<vmem>>, %arg3: memref<2x3x3xf32, #tpu.memory_space<vmem>>) attributes {dimension_semantics = [], scalar_prefetch = 0 : i64, scratch_operands = 0 : i64, tpu.core_type = #tpu.core_type<tc>} {
    %c0 = arith.constant 0 : index
    %c0_0 = arith.constant 0 : index
    %0 = vector.load %arg1[%c0, %c0_0] : memref<3x8xf32, #tpu.memory_space<vmem>>, vector<3x8xf32>
    %c0_1 = arith.constant 0 : index
    %c0_2 = arith.constant 0 : index
    %1 = vector.load %arg2[%c0_1, %c0_2] : memref<8x3xf32, #tpu.memory_space<vmem>>, vector<8x3xf32>
    %c0_3 = arith.constant 0 : index
    %c0_4 = arith.constant 0 : index
    %c0_5 = arith.constant 0 : index
    %c0_6 = arith.constant 0 : index
    %2 = vector.load %arg0[%c0_3, %c0_4, %c0_5, %c0_6] : memref<2x4x8x8xf32, #tpu.memory_space<vmem>>, vector<1x4x8x8xf32>
    %3 = vector.shape_cast %2 : vector<1x4x8x8xf32> to vector<4x8x8xf32>
    %cst = arith.constant 1.000000e-10 : f32
    %4 = vector.broadcast %cst : f32 to vector<4x8x8xf32>
    %5 = arith.addf %3, %4 : vector<4x8x8xf32>
    %6 = math.log %5 : vector<4x8x8xf32>
    %cst_7 = arith.constant 1.44269502 : f32
    %7 = vector.broadcast %cst_7 : f32 to vector<4x8x8xf32>
    %8 = arith.mulf %6, %7 : vector<4x8x8xf32>
    %9 = arith.mulf %3, %8 : vector<4x8x8xf32>
    %cst_8 = arith.constant dense<0.000000e+00> : vector<8x8xf32>
    %10 = vector.multi_reduction <add>, %9, %cst_8 [0] : vector<4x8x8xf32> to vector<8x8xf32>
    %cst_9 = arith.constant 0.000000e+00 : f32
    %11 = vector.broadcast %cst_9 : f32 to vector<8x8xf32>
    %12 = arith.subf %11, %10 : vector<8x8xf32>
    %cst_10 = arith.constant dense<0.000000e+00> : vector<3x8xf32>
    %13 = tpu.matmul %0, %12, %cst_10 {dimension_numbers = #tpu.dot_dimension_numbers<[1], [0], [0], [1], [0, 0, 1, 1], [], []>} : vector<3x8xf32>, vector<8x8xf32>, vector<3x8xf32> -> vector<3x8xf32>
    %cst_11 = arith.constant dense<0.000000e+00> : vector<3x3xf32>
    %14 = tpu.matmul %13, %1, %cst_11 {dimension_numbers = #tpu.dot_dimension_numbers<[1], [0], [0], [1], [0, 0, 1, 1], [], []>} : vector<3x8xf32>, vector<8x3xf32>, vector<3x3xf32> -> vector<3x3xf32>
    %c0_12 = arith.constant 0 : index
    %c0_13 = arith.constant 0 : index
    %c0_14 = arith.constant 0 : index
    %15 = vector.load %arg3[%c0_12, %c0_13, %c0_14] : memref<2x3x3xf32, #tpu.memory_space<vmem>>, vector<1x3x3xf32>
    %16 = vector.shape_cast %15 : vector<1x3x3xf32> to vector<3x3xf32>
    %17 = vector.shape_cast %14 : vector<3x3xf32> to vector<1x3x3xf32>
    tpu.vector_store %arg3[%c0_12, %c0_13, %c0_14], %17 {strides = array<i32>} : memref<2x3x3xf32, #tpu.memory_space<vmem>>, vector<1x3x3xf32>,
    %c1 = arith.constant 1 : index
    %c0_15 = arith.constant 0 : index
    %c0_16 = arith.constant 0 : index
    %c0_17 = arith.constant 0 : index
    %18 = vector.load %arg0[%c1, %c0_15, %c0_16, %c0_17] : memref<2x4x8x8xf32, #tpu.memory_space<vmem>>, vector<1x4x8x8xf32>
    %19 = vector.shape_cast %18 : vector<1x4x8x8xf32> to vector<4x8x8xf32>
    %cst_18 = arith.constant 1.000000e-10 : f32
    %20 = vector.broadcast %cst_18 : f32 to vector<4x8x8xf32>
    %21 = arith.addf %19, %20 : vector<4x8x8xf32>
    %22 = math.log %21 : vector<4x8x8xf32>
    %cst_19 = arith.constant 1.44269502 : f32
    %23 = vector.broadcast %cst_19 : f32 to vector<4x8x8xf32>
    %24 = arith.mulf %22, %23 : vector<4x8x8xf32>
    %25 = arith.mulf %19, %24 : vector<4x8x8xf32>
    %cst_20 = arith.constant dense<0.000000e+00> : vector<8x8xf32>
    %26 = vector.multi_reduction <add>, %25, %cst_20 [0] : vector<4x8x8xf32> to vector<8x8xf32>
    %cst_21 = arith.constant 0.000000e+00 : f32
    %27 = vector.broadcast %cst_21 : f32 to vector<8x8xf32>
    %28 = arith.subf %27, %26 : vector<8x8xf32>
    %cst_22 = arith.constant dense<0.000000e+00> : vector<3x8xf32>
    %29 = tpu.matmul %0, %28, %cst_22 {dimension_numbers = #tpu.dot_dimension_numbers<[1], [0], [0], [1], [0, 0, 1, 1], [], []>} : vector<3x8xf32>, vector<8x8xf32>, vector<3x8xf32> -> vector<3x8xf32>
    %cst_23 = arith.constant dense<0.000000e+00> : vector<3x3xf32>
    %30 = tpu.matmul %29, %1, %cst_23 {dimension_numbers = #tpu.dot_dimension_numbers<[1], [0], [0], [1], [0, 0, 1, 1], [], []>} : vector<3x8xf32>, vector<8x3xf32>, vector<3x3xf32> -> vector<3x3xf32>
    %c1_24 = arith.constant 1 : index
    %c0_25 = arith.constant 0 : index
    %c0_26 = arith.constant 0 : index
    %31 = vector.load %arg3[%c1_24, %c0_25, %c0_26] : memref<2x3x3xf32, #tpu.memory_space<vmem>>, vector<1x3x3xf32>
    %32 = vector.shape_cast %31 : vector<1x3x3xf32> to vector<3x3xf32>
    %33 = vector.shape_cast %30 : vector<3x3xf32> to vector<1x3x3xf32>
    tpu.vector_store %arg3[%c1_24, %c0_25, %c0_26], %33 {strides = array<i32>} : memref<2x3x3xf32, #tpu.memory_space<vmem>>, vector<1x3x3xf32>,
    return
  }
}

</mosaic_0001>

<bundles_post_ra>
// kernel: tpu_custom_call.1
= control target key start
LH: loop header
LB: loop body
LE: loop exit
PB: predicated region body
PF: predicated region fallthrough
CT: control target
= control target key end

     0   :  { %8 = vsyncpa [#allocation3], 0  ;;  %s472_s12 = smov [#allocation2]   ;;  %s545_s0 = inlined_call_operand.hbm [shape: f32[2,4,8,8], index: 0, kind: input, shape index: {}]   ;;  %s546_s1 = inlined_call_operand.vmem [shape: f32[3,8], index: 1, kind: input, shape index: {}]   ;;  %s547_s2 = inlined_call_operand.vmem [shape: f32[8,3], index: 2, kind: input, shape index: {}]   ;;  %s548_s3 = inlined_call_operand.vmem [shape: f32[2,3,3], index: 3, kind: output, shape index: {}]  }
   0x1   :  { %s14_s13 = sshll.u32 %s472_s12, 4  ;;  %s448_s16 = scalar_lea.hbm %s545_s0, 1024  ;;  %s15_s13 = int_to_ptr.vmem [resolvable:$true] %s14_s13 }
   0x2   :  { %p449_p0 = scmp.ne.s32.totalorder %s545_s0, %s448_s16  ;;  %p452_p1 = scmp.lt.u32.totalorder %s448_s16, %s545_s0 }
   0x4   :  { %p454_p2 = pnand %p452_p1, %p449_p0 }
   0x6   :  { %457 = shalt.err (!%p454_p2)
}
   0x7   :  { %s458_s21 = scalar_lea.vmem %s15_s13, 1024  ;;  %p463_p4 = scmp.lt.s32.totalorder %s15_s13, %s15_s13 }
   0x8   :  { %p459_p3 = scmp.ne.s32.totalorder %s15_s13, %s458_s21  ;;  %p464_p5 = scmp.lt.s32.totalorder %s458_s21, %s458_s21 }
   0xa   :  { %p465_p6 = por %p464_p5, %p463_p4 }
   0xc   :  { %p466_p7 = pnand %p465_p6, %p459_p3 }
   0xe   :  { %469 = shalt.err (!%p466_p7)
}
   0xf   :  { %s473_s22 = smov 128   ;;  %s474_s23 = smov 8  }
  0x10   :  { %20 = dma.hbm_to_vmem [thread:$0]  %s545_s0, 1024, %s15_s13, [#allocation3], %s473_s22, %s473_s22, %s474_s23  }
  0x11   :  { %470 = dma.done.wait [#allocation3], 1024  }
  0x12   :  { %471 = vsyncadd [#allocation3], 4294966272  ;;  %v475_v0 = vmov 0.0   ;;  %vm476_vm0 = vmmov 0   ;;  %v30_v1 = vld [vmem:[#allocation2] sm:$0xff]  ;;  %v31_v2 = vld [vmem:[#allocation2 + $0x8] sm:$0xff] }
  0x13   :  { %407 = vmatprep.subr.mxu0 %v475_v0  ;;  %409 = vmatprep.mubr.msk.f32.mxu0 %vm476_vm0, %v475_v0  ;;  %v32_v3 = vld [vmem:[#allocation2 + $0x10] sm:$0xff]  ;;  %v33_v4 = vld [vmem:[#allocation2 + $0x18] sm:$0xff]  ;;  %v34_v5 = vadd.f32 1e-10, %v30_v1  ;;  %v35_v6 = vadd.f32 1e-10, %v31_v2 }
  0x14   :  { %412 = vmatprep.subr.mxu1 %v475_v0  ;;  %414 = vmatprep.mubr.msk.f32.mxu1 %vm476_vm0, %v475_v0  ;;  %v212_v7 = vld [vmem:[#allocation2 + $0x20] sm:$0xff]  ;;  %v36_v8 = vadd.f32 1e-10, %v32_v3  ;;  %v37_v9 = vadd.f32 1e-10, %v33_v4  ;;  %v213_v10 = vld [vmem:[#allocation2 + $0x28] sm:$0xff] }
  0x15   :  { %432 = vlog2.f32 %v34_v5  ;;  %v214_v11 = vld [vmem:[#allocation2 + $0x30] sm:$0xff]  ;;  %v215_v12 = vld [vmem:[#allocation2 + $0x38] sm:$0xff]  ;;  %v216_v13 = vadd.f32 1e-10, %v212_v7  ;;  %v217_v14 = vadd.f32 1e-10, %v213_v10 }
  0x16   :  { %434 = vlog2.f32 %v35_v6  ;;  %v218_v15 = vadd.f32 1e-10, %v214_v11  ;;  %v219_v16 = vadd.f32 1e-10, %v215_v12  ;;  %vm54_vm1 = vcmask 64512  }
  0x17   :  { %436 = vlog2.f32 %v36_v8  ;;  %v28_v62 = vld [vmem:[%s546_s1] sm:$0x7]  ;;  %vm209_vm2 = vcmask 18432  }
  0x18   :  { %438 = vlog2.f32 %v37_v9 }
  0x19   :  { %440 = vlog2.f32 %v216_v13 }
  0x1a   :  { %442 = vlog2.f32 %v217_v14 }
  0x1b   :  { %444 = vlog2.f32 %v218_v15 }
  0x1c   :  { %446 = vlog2.f32 %v219_v16 }
  0x1f   :  { %v433_v17 = vpop.eup %432 }
  0x20   :  { %v435_v18 = vpop.eup %434  ;;  %v39_v19 = vmul.f32 0.6931472, %v433_v17 }
  0x21   :  { %v437_v20 = vpop.eup %436  ;;  %v41_v21 = vmul.f32 0.6931472, %v435_v18 }
  0x22   :  { %v439_v22 = vpop.eup %438  ;;  %v43_v23 = vmul.f32 0.6931472, %v437_v20  ;;  %v46_v24 = vmul.f32 1.442695, %v39_v19 }
  0x23   :  { %v441_v25 = vpop.eup %440  ;;  %v45_v26 = vmul.f32 0.6931472, %v439_v22  ;;  %v47_v27 = vmul.f32 1.442695, %v41_v21 }
  0x24   :  { %v443_v28 = vpop.eup %442  ;;  %v48_v29 = vmul.f32 1.442695, %v43_v23  ;;  %v50_v30 = vmul.f32 %v46_v24, %v30_v1  ;;  %v221_v31 = vmul.f32 0.6931472, %v441_v25 }
  0x25   :  { %v445_v32 = vpop.eup %444  ;;  %v49_v33 = vmul.f32 1.442695, %v45_v26  ;;  %v51_v34 = vmul.f32 %v47_v27, %v31_v2  ;;  %v223_v35 = vmul.f32 0.6931472, %v443_v28 }
  0x26   :  { %v447_v36 = vpop.eup %446  ;;  %v52_v37 = vmul.f32 %v48_v29, %v32_v3  ;;  %v55_v38 = vsel %vm54_vm1, %v50_v30, 0.0  ;;  %v225_v39 = vmul.f32 0.6931472, %v445_v32  ;;  %v228_v40 = vmul.f32 1.442695, %v221_v31  ;;  %v29_v3 = vld [vmem:[%s547_s2] sm:$0xff] }
  0x27   :  { %v53_v41 = vmul.f32 %v49_v33, %v33_v4  ;;  %v56_v42 = vsel %vm54_vm1, %v51_v34, 0.0  ;;  %v227_v43 = vmul.f32 0.6931472, %v447_v36  ;;  %v229_v44 = vmul.f32 1.442695, %v223_v35  ;;  %413 = vmatpush3.msra.mxu1 %v29_v3 }
  0x28   :  { %v57_v45 = vadd.f32 %v56_v42, %v55_v38  ;;  %v58_v46 = vsel %vm54_vm1, %v52_v37, 0.0  ;;  %v230_v47 = vmul.f32 1.442695, %v225_v39  ;;  %v232_v48 = vmul.f32 %v228_v40, %v212_v7  ;;  %422 = vmatprep.subr.mxu1 %v475_v0 }
  0x29   :  { %v60_v49 = vsel %vm54_vm1, %v53_v41, 0.0  ;;  %v231_v50 = vmul.f32 1.442695, %v227_v43  ;;  %v233_v51 = vmul.f32 %v229_v44, %v213_v10 }
  0x2a   :  { %v59_v52 = vadd.f32 %v58_v46, %v57_v45  ;;  %v234_v53 = vmul.f32 %v230_v47, %v214_v11  ;;  %v236_v54 = vsel %vm54_vm1, %v232_v48, 0.0 }
  0x2b   :  { %v235_v55 = vmul.f32 %v231_v50, %v215_v12  ;;  %v237_v56 = vsel %vm54_vm1, %v233_v51, 0.0 }
  0x2c   :  { %v61_v57 = vadd.f32 %v60_v49, %v59_v52  ;;  %v238_v58 = vadd.f32 %v237_v56, %v236_v54  ;;  %v239_v59 = vsel %vm54_vm1, %v234_v53, 0.0 }
  0x2d   :  { %v241_v60 = vsel %vm54_vm1, %v235_v55, 0.0 }
  0x2e   :  { %v62_v61 = vsub.f32 0.0, %v61_v57  ;;  %v240_v63 = vadd.f32 %v239_v59, %v238_v58 }
  0x30   :  { %408 = vmatpush3.msra.mxu0 %v62_v61  ;;  %v242_v1 = vadd.f32 %v241_v60, %v240_v63 }
  0x31   :  { %410 = vmatmul.mubr.msk.f32.vlgmr.msra.gmra.mrb[0].mxu0 %vm54_vm1, %v28_v62  ;;  %417 = vmatprep.subr.mxu0 %v475_v0 }
  0x32   :  { %v243_v2 = vsub.f32 0.0, %v242_v1  ;;  %419 = vmatprep.mubr.msk.f32.mxu0 %vm476_vm0, %v475_v0 }
  0x34   :  { %418 = vmatpush3.msra.mxu0 %v243_v2 }
  0x35   :  { %420 = vmatmul.mubr.msk.f32.vlgmr.msra.gmra.mrb[2].mxu0 %vm54_vm1, %v28_v62 }
 0x104   :  { %v132_v4 = vpop.f32.mrb[0].mxu0 }
 0x105   :  { %v411_v5 = vpop.f32.mrb[1].mxu0  ;;  %415 = vmatmul.mubr.msk.f32.vlgmr.msra.gmra.mrb[0].mxu1 %vm54_vm1, %v132_v4 }
 0x106   :  { %423 = vmatpush3.msra.mxu1 %v29_v3  ;;  %424 = vmatprep.mubr.msk.f32.mxu1 %vm476_vm0, %v475_v0 }
 0x108   :  { %v310_v6 = vpop.f32.mrb[2].mxu0 }
 0x109   :  { %v421_v7 = vpop.f32.mrb[3].mxu0  ;;  %425 = vmatmul.mubr.msk.f32.vlgmr.msra.gmra.mrb[2].mxu1 %vm54_vm1, %v310_v6 }
 0x1d8   :  { %v205_v8 = vpop.f32.mrb[0].mxu1 }
 0x1d9   :  { %210 = vst.msk [vmem:[%s548_s3] sm:$0x7] %vm209_vm2, %v205_v8  ;;  %v416_v9 = vpop.f32.mrb[1].mxu1 }
 0x1dc   :  { %v383_v10 = vpop.f32.mrb[2].mxu1 }
 0x1dd   :  { %398 = vst.msk [vmem:[%s548_s3 + $0x4] sm:$0x7] %vm209_vm2, %v383_v10  ;;  %v426_v11 = vpop.f32.mrb[3].mxu1 }
 0x1de   :  { %393 = vsyncpa [#allocation3], 1 }

</bundles_post_ra>
